<compile_context>
chip_gen: v5e
topology: v5e:2x2
jax: 0.10.0
libtpu: 0.0.40
codegen_flags: <defaults>
</compile_context>

<pallas_src>
import functools

import jax
import jax.numpy as jnp
from jax.experimental import pallas as pl
from jax.experimental.pallas import tpu as pltpu

HIDDEN = 10          # fc1 output features (torch)
HIDDEN_PAD = 128     # fc1 features zero-padded to one full lane width
NUM_CLASSES = 5      # fc2 output features

MAX_TILE_B = 4096            # batch-tile cap (512 was below the ~85% roofline knee)
MIN_SPLIT_B = 1024           # split a large single-tile batch in two -> nb>=2 (v7x 2 TCs)
VMEM_BUDGET_BYTES = 12 << 20  # stay under v5e's 16 MiB scoped-VMEM default


def _round_up(v, m):
    return -(-v // m) * m


def _batch_tiling(batch, in_dim):
    """Pick a batch tile from a VMEM budget; prefer nb >= 2 on large batches."""
    # Double-buffered per-row footprint: bf16 x + f32 logits, plus f32 hidden scratch.
    per_row = 2 * (2 * in_dim + 4 * NUM_CLASSES) + 4 * HIDDEN_PAD
    cap = min(MAX_TILE_B, max(256, VMEM_BUDGET_BYTES // per_row))
    cap -= cap % 8
    if batch <= cap:
        if batch >= 2 * MIN_SPLIT_B:
            tb = _round_up((batch + 1) // 2, 16)   # ~batch/2, sublane-aligned
        else:
            tb = batch
    else:
        tb = cap
    return tb, pl.cdiv(batch, tb)


# ---------------------------------------------------------------------------
# Kernels
# ---------------------------------------------------------------------------
def _logits_kernel(x_ref, w1_ref, b1_ref, w2_ref, b2_ref, o_ref):
    """Inference: fc1 -> ReLU -> fc2, f32 accumulation, (tb, 5) output."""
    x = x_ref[...]                                                      # [tb, in]   bf16
    h = jnp.dot(x, w1_ref[...], preferred_element_type=jnp.float32)    # [tb, 128]  f32
    h = jnp.maximum(h + b1_ref[...], 0.0)
    o_ref[...] = (jnp.dot(h.astype(jnp.bfloat16), w2_ref[...],
                          preferred_element_type=jnp.float32)
                  + b2_ref[...])                                        # [tb, 5]    f32


def _loss_kernel(x_ref, w1_ref, b1_ref, w2_ref, b2_ref, y_ref, loss_ref, *,
                 total_batch, tile_batch):
    """Training: per-batch-tile partial sum of cross-entropy NLL -> SMEM scalar."""
    i = pl.program_id(0)

    x = x_ref[...]                                                      # [tb, in]   bf16
    h = jnp.dot(x, w1_ref[...], preferred_element_type=jnp.float32)    # [tb, 128]  f32
    h = jnp.maximum(h + b1_ref[...], 0.0)
    logits = (jnp.dot(h.astype(jnp.bfloat16), w2_ref[...],
                      preferred_element_type=jnp.float32)
              + b2_ref[...])                                            # [tb, 5]    f32

    # Numerically-stable cross-entropy with integer targets (f32 math).
    m = jnp.max(logits, axis=-1, keepdims=True)                         # [tb, 1]
    lse = jnp.log(jnp.sum(jnp.exp(logits - m), axis=-1, keepdims=True)) + m
    labels = y_ref[...]                                                 # [tb, 1] int32
    classes = jax.lax.broadcasted_iota(jnp.int32, logits.shape, 1)
    correct = jnp.sum(jnp.where(classes == labels, logits, 0.0),
                      axis=-1, keepdims=True)
    nll = lse - correct                                                 # [tb, 1]

    # Mask pad rows of a possibly-partial final batch tile.
    rows = i * tile_batch + jax.lax.broadcasted_iota(jnp.int32, nll.shape, 0)
    nll = jnp.where(rows < total_batch, nll, 0.0)

    loss_ref[0] = jnp.sum(nll)                                          # 1-D SMEM scalar


# ---------------------------------------------------------------------------
# Wrappers
# ---------------------------------------------------------------------------
@jax.jit
def _run_logits(x, w1p, b1p, w2p, b2p):
    batch, in_dim = x.shape
    tb, nb = _batch_tiling(batch, in_dim)
    x = x.astype(jnp.bfloat16)          # halve the dominant HBM read (f32 acc inside)
    cost = pl.CostEstimate(
        flops=2 * batch * (in_dim * HIDDEN_PAD + HIDDEN_PAD * NUM_CLASSES),
        transcendentals=0,
        bytes_accessed=(2 * batch * in_dim + 2 * in_dim * HIDDEN_PAD
                        + 4 * HIDDEN_PAD + 2 * HIDDEN_PAD * NUM_CLASSES
                        + 4 * NUM_CLASSES + 4 * batch * NUM_CLASSES))
    return pl.pallas_call(
        _logits_kernel,
        out_shape=jax.ShapeDtypeStruct((batch, NUM_CLASSES), jnp.float32),
        grid=(nb,),
        in_specs=[
            pl.BlockSpec((tb, in_dim), lambda i: (i, 0)),           # x: batch-tiled
            pl.BlockSpec((in_dim, HIDDEN_PAD), lambda i: (0, 0)),   # weights stay resident
            pl.BlockSpec((1, HIDDEN_PAD), lambda i: (0, 0)),
            pl.BlockSpec((HIDDEN_PAD, NUM_CLASSES), lambda i: (0, 0)),
            pl.BlockSpec((1, NUM_CLASSES), lambda i: (0, 0)),
        ],
        out_specs=pl.BlockSpec((tb, NUM_CLASSES), lambda i: (i, 0)),
        compiler_params=pltpu.CompilerParams(
            dimension_semantics=("parallel",)),
        cost_estimate=cost,
    )(x, w1p, b1p, w2p, b2p)


@jax.jit
def _run_loss(x, w1p, b1p, w2p, b2p, y_int):
    batch, in_dim = x.shape
    tb, nb = _batch_tiling(batch, in_dim)
    x = x.astype(jnp.bfloat16)
    kernel = functools.partial(_loss_kernel, total_batch=batch, tile_batch=tb)
    cost = pl.CostEstimate(
        flops=2 * batch * (in_dim * HIDDEN_PAD + HIDDEN_PAD * NUM_CLASSES)
              + 12 * batch * NUM_CLASSES,
        transcendentals=batch * (NUM_CLASSES + 1),
        bytes_accessed=(2 * batch * in_dim + 2 * in_dim * HIDDEN_PAD
                        + 4 * HIDDEN_PAD + 2 * HIDDEN_PAD * NUM_CLASSES
                        + 4 * NUM_CLASSES + 4 * batch + 4 * nb))
    partial_sums = pl.pallas_call(
        kernel,
        out_shape=jax.ShapeDtypeStruct((nb,), jnp.float32),   # per-tile NLL sums
        grid=(nb,),
        in_specs=[
            pl.BlockSpec((tb, in_dim), lambda i: (i, 0)),           # x: batch-tiled
            pl.BlockSpec((in_dim, HIDDEN_PAD), lambda i: (0, 0)),   # resident weights
            pl.BlockSpec((1, HIDDEN_PAD), lambda i: (0, 0)),
            pl.BlockSpec((HIDDEN_PAD, NUM_CLASSES), lambda i: (0, 0)),
            pl.BlockSpec((1, NUM_CLASSES), lambda i: (0, 0)),
            pl.BlockSpec((tb, 1), lambda i: (i, 0)),                # labels
        ],
        out_specs=pl.BlockSpec((1,), lambda i: (i,),
                               memory_space=pltpu.MemorySpace.SMEM),
        compiler_params=pltpu.CompilerParams(
            dimension_semantics=("parallel",)),
        cost_estimate=cost,
    )(x, w1p, b1p, w2p, b2p, y_int)
    return jnp.sum(partial_sums) / jnp.float32(batch)          # mean reduction


# ---------------------------------------------------------------------------
# Parameters
# ---------------------------------------------------------------------------
def init_params(input_size, key):
    """torch.nn.Linear-style uniform init; stored transposed ([in, out]) in f32."""
    k1, k2, k3, k4 = jax.random.split(key, 4)
    bound1 = 1.0 / jnp.sqrt(jnp.float32(input_size))
    bound2 = 1.0 / jnp.sqrt(jnp.float32(HIDDEN))
    w1 = jax.random.uniform(k1, (input_size, HIDDEN), jnp.float32, -bound1, bound1)
    b1 = jax.random.uniform(k2, (1, HIDDEN), jnp.float32, -bound1, bound1)
    w2 = jax.random.uniform(k3, (HIDDEN, NUM_CLASSES), jnp.float32, -bound2, bound2)
    b2 = jax.random.uniform(k4, (1, NUM_CLASSES), jnp.float32, -bound2, bound2)
    return w1, b1, w2, b2


def prepare_params(params):
    """One-time kernel-side prep (hoisted out of the jitted per-call wrappers):
    zero-pad HIDDEN 10 -> 128 (ReLU(0)=0, zero W2 rows contribute nothing, so
    results are unchanged) and cast matmul weights to bf16; biases stay f32."""
    w1, b1, w2, b2 = params
    pad_h = HIDDEN_PAD - HIDDEN
    w1p = jnp.pad(w1, ((0, 0), (0, pad_h))).astype(jnp.bfloat16)
    b1p = jnp.pad(b1, ((0, 0), (0, pad_h)))
    w2p = jnp.pad(w2, ((0, pad_h), (0, 0))).astype(jnp.bfloat16)
    b2p = b2
    return w1p, b1p, w2p, b2p


def torch_model_forward(x, prepared_params, y=None):
    """Mirrors TorchModel.forward: logits if y is None, else scalar CE loss."""
    w1p, b1p, w2p, b2p = prepared_params
    if y is None:
        return _run_logits(x, w1p, b1p, w2p, b2p)
    y_int = y.astype(jnp.int32).reshape(x.shape[0], 1)
    return _run_loss(x, w1p, b1p, w2p, b2p, y_int)


if __name__ == "__main__":
    key = jax.random.PRNGKey(0)
    k_param, k_x, k_y = jax.random.split(key, 3)

    input_size = 32
    batch = 8

    raw_params = init_params(input_size, k_param)
    params = prepare_params(raw_params)
    x = jax.random.normal(k_x, (batch, input_size), jnp.float32)
    y = jax.random.randint(k_y, (batch,), 0, NUM_CLASSES, jnp.int32)

    # Kernel results
    logits = torch_model_forward(x, params)          # inference path (logits kernel)
    loss = torch_model_forward(x, params, y)         # training path (CE-loss kernel)
    jax.block_until_ready((logits, loss))

    # Pure-JAX reference with matching bf16-input / f32-accumulate precision.
    w1, b1, w2, b2 = raw_params
    h_ref = jnp.maximum(
        jnp.dot(x.astype(jnp.bfloat16), w1.astype(jnp.bfloat16),
                preferred_element_type=jnp.float32) + b1, 0.0)
    logits_ref = jnp.dot(h_ref.astype(jnp.bfloat16), w2.astype(jnp.bfloat16),
                         preferred_element_type=jnp.float32) + b2
    lse = jax.scipy.special.logsumexp(logits_ref, axis=-1)
    loss_ref = jnp.mean(lse - logits_ref[jnp.arange(batch), y])

    assert logits.shape == (batch, NUM_CLASSES)
    assert loss.shape == ()
    assert jnp.allclose(logits, logits_ref, atol=5e-3, rtol=5e-3)
    assert jnp.allclose(loss, loss_ref, atol=5e-3, rtol=5e-3)

    print("KERNEL_OK")
</pallas_src>

<mosaic_0001>
module attributes {stable_mosaic.version = 11 : i64} {
  func.func @_logits_kernel(%arg0: i32, %arg1: memref<8x32xbf16, #tpu.memory_space<vmem>>, %arg2: memref<32x128xbf16, #tpu.memory_space<vmem>>, %arg3: memref<1x128xf32, #tpu.memory_space<vmem>>, %arg4: memref<128x5xbf16, #tpu.memory_space<vmem>>, %arg5: memref<1x5xf32, #tpu.memory_space<vmem>>, %arg6: memref<8x5xf32, #tpu.memory_space<vmem>>) attributes {dimension_semantics = [#tpu.dimension_semantics<parallel>], iteration_bounds = array<i64: 1>, scalar_prefetch = 0 : i64, scratch_operands = 0 : i64, tpu.core_type = #tpu.core_type<tc>, window_params = [{transform_indices = @transform_0, window_bounds = array<i64: 8, 32>}, {pipeline_mode = #tpu.pipeline_mode<synchronous>, transform_indices = @transform_1, window_bounds = array<i64: 32, 128>}, {pipeline_mode = #tpu.pipeline_mode<synchronous>, transform_indices = @transform_2, window_bounds = array<i64: 1, 128>}, {pipeline_mode = #tpu.pipeline_mode<synchronous>, transform_indices = @transform_3, window_bounds = array<i64: 128, 5>}, {pipeline_mode = #tpu.pipeline_mode<synchronous>, transform_indices = @transform_4, window_bounds = array<i64: 1, 5>}, {transform_indices = @transform_5, window_bounds = array<i64: 8, 5>}]} {
    %c0 = arith.constant 0 : index
    %c0_0 = arith.constant 0 : index
    %0 = vector.load %arg1[%c0, %c0_0] : memref<8x32xbf16, #tpu.memory_space<vmem>>, vector<8x32xbf16>
    %c0_1 = arith.constant 0 : index
    %c0_2 = arith.constant 0 : index
    %1 = vector.load %arg2[%c0_1, %c0_2] : memref<32x128xbf16, #tpu.memory_space<vmem>>, vector<32x128xbf16>
    %cst = arith.constant dense<0.000000e+00> : vector<8x128xf32>
    %2 = tpu.matmul %0, %1, %cst {dimension_numbers = #tpu.dot_dimension_numbers<[1], [0], [0], [1], [0, 0, 1, 1], [], []>} : vector<8x32xbf16>, vector<32x128xbf16>, vector<8x128xf32> -> vector<8x128xf32>
    %c0_3 = arith.constant 0 : index
    %c0_4 = arith.constant 0 : index
    %3 = vector.load %arg3[%c0_3, %c0_4] : memref<1x128xf32, #tpu.memory_space<vmem>>, vector<1x128xf32>
    %4 = vector.broadcast %3 : vector<1x128xf32> to vector<8x128xf32>
    %5 = arith.addf %2, %4 : vector<8x128xf32>
    %cst_5 = arith.constant 0.000000e+00 : f32
    %6 = vector.broadcast %cst_5 : f32 to vector<8x128xf32>
    %7 = arith.maximumf %5, %6 : vector<8x128xf32>
    %8 = arith.truncf %7 : vector<8x128xf32> to vector<8x128xbf16>
    %c0_6 = arith.constant 0 : index
    %c0_7 = arith.constant 0 : index
    %9 = vector.load %arg4[%c0_6, %c0_7] : memref<128x5xbf16, #tpu.memory_space<vmem>>, vector<128x5xbf16>
    %cst_8 = arith.constant dense<0.000000e+00> : vector<8x5xf32>
    %10 = tpu.matmul %8, %9, %cst_8 {dimension_numbers = #tpu.dot_dimension_numbers<[1], [0], [0], [1], [0, 0, 1, 1], [], []>} : vector<8x128xbf16>, vector<128x5xbf16>, vector<8x5xf32> -> vector<8x5xf32>
    %c0_9 = arith.constant 0 : index
    %c0_10 = arith.constant 0 : index
    %11 = vector.load %arg5[%c0_9, %c0_10] : memref<1x5xf32, #tpu.memory_space<vmem>>, vector<1x5xf32>
    %12 = vector.broadcast %11 : vector<1x5xf32> to vector<8x5xf32>
    %13 = arith.addf %10, %12 : vector<8x5xf32>
    %c0_11 = arith.constant 0 : index
    %c0_12 = arith.constant 0 : index
    %14 = vector.load %arg6[%c0_11, %c0_12] : memref<8x5xf32, #tpu.memory_space<vmem>>, vector<8x5xf32>
    tpu.vector_store %arg6[%c0_11, %c0_12], %13 {strides = array<i32>} : memref<8x5xf32, #tpu.memory_space<vmem>>, vector<8x5xf32>,
    return
  }
  func.func @transform_0(%arg0: i32) -> (i32, i32) {
    %c0_i32 = arith.constant 0 : i32
    %c0_i32_0 = arith.constant 0 : i32
    return %arg0, %c0_i32 : i32, i32
  }
  func.func @transform_1(%arg0: i32) -> (i32, i32) {
    %c0_i32 = arith.constant 0 : i32
    %c0_i32_0 = arith.constant 0 : i32
    %c0_i32_1 = arith.constant 0 : i32
    return %c0_i32, %c0_i32_0 : i32, i32
  }
  func.func @transform_2(%arg0: i32) -> (i32, i32) {
    %c0_i32 = arith.constant 0 : i32
    %c0_i32_0 = arith.constant 0 : i32
    %c0_i32_1 = arith.constant 0 : i32
    return %c0_i32, %c0_i32_0 : i32, i32
  }
  func.func @transform_3(%arg0: i32) -> (i32, i32) {
    %c0_i32 = arith.constant 0 : i32
    %c0_i32_0 = arith.constant 0 : i32
    %c0_i32_1 = arith.constant 0 : i32
    return %c0_i32, %c0_i32_0 : i32, i32
  }
  func.func @transform_4(%arg0: i32) -> (i32, i32) {
    %c0_i32 = arith.constant 0 : i32
    %c0_i32_0 = arith.constant 0 : i32
    %c0_i32_1 = arith.constant 0 : i32
    return %c0_i32, %c0_i32_0 : i32, i32
  }
  func.func @transform_5(%arg0: i32) -> (i32, i32) {
    %c0_i32 = arith.constant 0 : i32
    %c0_i32_0 = arith.constant 0 : i32
    return %arg0, %c0_i32 : i32, i32
  }
}

</mosaic_0001>

<bundles_post_ra>
// kernel: _run_logits.1
= control target key start
LH: loop header
LB: loop body
LE: loop exit
PB: predicated region body
PF: predicated region fallthrough
CT: control target
= control target key end

     0   :  { %s314_s0 = inlined_call_operand.vmem [shape: bf16[8,32], index: 0, kind: input, shape index: {}]   ;;  %s315_s1 = inlined_call_operand.vmem [shape: bf16[32,128], index: 1, kind: input, shape index: {}]   ;;  %s316_s2 = inlined_call_operand.vmem [shape: f32[1,128], index: 2, kind: input, shape index: {}]   ;;  %s317_s3 = inlined_call_operand.vmem [shape: bf16[128,5], index: 3, kind: input, shape index: {}]   ;;  %s318_s4 = inlined_call_operand.vmem [shape: f32[1,5], index: 4, kind: input, shape index: {}]   ;;  %s319_s5 = inlined_call_operand.hbm [shape: f32[8,5], index: 5, kind: output, shape index: {}]  }
   0x1   :  { %v203_v0 = vld [vmem:[%s315_s1 + $0x8] sm:$0xff]  ;;  %v211_v1 = vld [vmem:[%s317_s3 + $0x38] sm:$0xff]  ;;  %v202_v2 = vld [vmem:[%s315_s1] sm:$0xff] }
   0x2   :  { %53 = vmatpush.bf16.msra.mxu0 %v203_v0  ;;  %130 = vmatpush.bf16.msra.mxu1 %v211_v1  ;;  %v210_v3 = vld [vmem:[%s317_s3 + $0x30] sm:$0xff] }
   0x3   :  { %10 = vsyncpa [#allocation3], 0  ;;  %v22_v4 = vld [vmem:[%s314_s0] sm:$0xf]  ;;  %vm43_vm0 = vcmask 261120   ;;  %v209_v5 = vld [vmem:[%s317_s3 + $0x28] sm:$0xff] }
   0x4   :  { %v208_v6 = vld [vmem:[%s317_s3 + $0x20] sm:$0xff]  ;;  %v207_v7 = vld [vmem:[%s317_s3 + $0x18] sm:$0xff]  ;;  %v206_v8 = vld [vmem:[%s317_s3 + $0x10] sm:$0xff]  ;;  %s241_s17 = smov [#allocation2]   ;;  %vm143_vm1 = vcmask 39936  }
   0x5   :  { %v205_v9 = vld [vmem:[%s317_s3 + $0x8] sm:$0xff]  ;;  %v204_v10 = vld [vmem:[%s317_s3] sm:$0xff]  ;;  %s150_s18 = sshll.u32 %s241_s17, 4  ;;  %s152_s3 = sshll.u32 %s319_s5, 4  ;;  %s151_s18 = int_to_ptr.vmem [resolvable:$true] %s150_s18  ;;  %s153_s3 = int_to_ptr.hbm [resolvable:$true] %s152_s3 }
   0x6   :  { %54 = vmatpush.bf16.msra.mxu0 %v202_v2  ;;  %131 = vmatpush.bf16.msra.mxu1 %v210_v3  ;;  %v213_v11 = vld [vmem:[%s316_s2] ss:$0 sm:$0xff] }
   0x7   :  { %v214_v17 = vld [vmem:[%s318_s4] ss:$0 sm:$0xff] }
   0x9   :  { %169 = vmatmul.msk.bf16.vlgmr.msra.gmra.mxu0 %vm43_vm0, %v22_v4 }
   0xa   :  { %132 = vmatpush.bf16.msra.mxu1 %v209_v5 }
   0xe   :  { %133 = vmatpush.bf16.msra.mxu1 %v208_v6 }
  0x12   :  { %134 = vmatpush.bf16.msra.mxu1 %v207_v7 }
  0x16   :  { %135 = vmatpush.bf16.msra.mxu1 %v206_v8 }
  0x1a   :  { %136 = vmatpush.bf16.msra.mxu1 %v205_v9 }
  0x1e   :  { %137 = vmatpush.bf16.msra.mxu1 %v204_v10 }
  0x86   :  { %v56_v12 = vpop.f32.mrf.mxu0 }
  0x87   :  { %v57_v13 = vadd.f32 %v213_v11, %v56_v12 }
  0x89   :  { %v60_v14 = vmax.f32 %v57_v13, 0.0 }
  0x8b   :  { %v61_v15 = vpack.c.bf16 %v60_v14, %v60_v14 }
  0x8d   :  { %138 = vmatmul.bf16.vlgmr.msra.gmra.mxu1 %v61_v15 }
  0x8e   :  { %v58_v16 = vpop.f32.mrf.mxu0 }
 0x10a   :  { %v139_v18 = vpop.f32.mrf.mxu1 }
 0x10b   :  { %v140_v19 = vadd.f32 %v214_v17, %v139_v18 }
 0x10d   :  { %144 = vst.msk [vmem:[#allocation2] sm:$0xff] %vm143_vm1, %v140_v19 }
 0x10e   :  { %155 = dma.vmem_to_hbm [thread:$0]  %s151_s18, 128, %s153_s3, [#allocation3]  }
 0x112   :  { %v141_v20 = vpop.f32.mrf.mxu1 }
 0x113   :  { %239 = dma.done.wait [#allocation3], 128  }
 0x114   :  { %240 = vsyncadd [#allocation3], 4294967168 }
 0x115   :  { %160 = vsyncpa [#allocation3], 1 }

</bundles_post_ra>
